<compile_context>
chip_gen: v7x
topology: tpu7x:2x2x1
jax: 0.10.0
libtpu: 0.0.40
codegen_flags: <defaults>
</compile_context>

<pallas_src>
import functools
import math

import jax
import jax.numpy as jnp
from jax.experimental import pallas as pl
from jax.experimental.pallas import tpu as pltpu


# ------------------------------ fused kernel --------------------------------

def _fasthemal_kernel(ids_ref,      # VMEM (T*Bp, 1) int32 time-major ids, -1 = pad
                      emb_ref,      # VMEM (V, E)   embedding table
                      tok_wih_ref,  # VMEM (E, 4H)  token LSTM W_ih, gates [i|f|g|o] on lanes
                      tok_whh_ref,  # VMEM (H, 4H)  token LSTM W_hh
                      tok_b_ref,    # VMEM (1, 4H)  token LSTM bias (b_ih + b_hh)
                      ins_wih_ref,  # VMEM (H, 4H)  instr LSTM W_ih
                      ins_whh_ref,  # VMEM (H, 4H)  instr LSTM W_hh
                      ins_b_ref,    # VMEM (1, 4H)  instr LSTM bias
                      lin_w_ref,    # VMEM (H, C)
                      lin_b_ref,    # VMEM (1, C)
                      out_ref,      # VMEM (1, C)
                      *, T, Bp, B, H):
    V = emb_ref.shape[0]
    TB = T * Bp

    # ---- Embedding gather as a one-hot matmul (no scalar loops, no scratch).
    ids = ids_ref[...]                                            # (TB, 1) int32
    lane = jax.lax.broadcasted_iota(jnp.int32, (TB, V), 1)
    onehot = (lane == ids).astype(jnp.float32)                    # (TB, V)
    x = jnp.dot(onehot, emb_ref[...],
                preferred_element_type=jnp.float32)               # (TB, E)

    # ---- Token LSTM: hoisted fused input projection (one lane-dense matmul).
    tok_xg = (jnp.dot(x, tok_wih_ref[...],
                      preferred_element_type=jnp.float32)
              + tok_b_ref[...])                                   # (TB, 4H)
    tok_whh = tok_whh_ref[...]                                    # (H, 4H), 4 vregs

    h = jnp.zeros((Bp, H), jnp.float32)
    c = jnp.zeros((Bp, H), jnp.float32)
    for t in range(T):                                            # fully unrolled
        # Aligned (8,128) tile slice + ONE MXU push on the serial path.
        gates = tok_xg[t * Bp:(t + 1) * Bp, :] + jnp.dot(
            h, tok_whh, preferred_element_type=jnp.float32)       # (Bp, 4H)
        sig = jax.nn.sigmoid(gates)                               # 1 EUP pass, full vreg
        tan = jnp.tanh(gates)                                     # 1 EUP pass, full vreg
        gi = sig[:, 0 * H:1 * H]
        gf = sig[:, 1 * H:2 * H]
        gg = tan[:, 2 * H:3 * H]
        go = sig[:, 3 * H:4 * H]
        c = gf * c + gi * gg
        h = go * jnp.tanh(c)                                      # (Bp, H)

    # ---- Instruction LSTM over the B real token hidden states (batch 1).
    ins_xg = (jnp.dot(h, ins_wih_ref[...],
                      preferred_element_type=jnp.float32)
              + ins_b_ref[...])                                   # (Bp, 4H); rows >= B unused
    ins_whh = ins_whh_ref[...]

    h2 = jnp.zeros((1, H), jnp.float32)
    c2 = jnp.zeros((1, H), jnp.float32)
    for n in range(B):                                            # fully unrolled
        gates = ins_xg[n:n + 1, :] + jnp.dot(
            h2, ins_whh, preferred_element_type=jnp.float32)      # (1, 4H)
        sig = jax.nn.sigmoid(gates)
        tan = jnp.tanh(gates)
        gi = sig[:, 0 * H:1 * H]
        gf = sig[:, 1 * H:2 * H]
        gg = tan[:, 2 * H:3 * H]
        go = sig[:, 3 * H:4 * H]
        c2 = gf * c2 + gi * gg
        h2 = go * jnp.tanh(c2)

    # ---- Linear head.
    out_ref[...] = (jnp.dot(h2, lin_w_ref[...],
                            preferred_element_type=jnp.float32)
                    + lin_b_ref[...])


# ------------------------------ JAX wrapper ----------------------------------

_VMEM = pl.BlockSpec(memory_space=pltpu.MemorySpace.VMEM)


def fasthemal_forward(params, token_ids):
    """token_ids: int32 (num_instrs, tokens_per_instr) -> scalar prediction."""
    B, T = token_ids.shape
    H = params["tok_whh"].shape[0]
    C = params["lin_w_t"].shape[1]
    Bp = ((B + 7) // 8) * 8   # pad batch to full sublane tiles

    # Time-major ids padded to Bp rows per step; padding rows get -1 so the
    # in-kernel one-hot produces a zero embedding (well-defined, ignored).
    ids_tm = jnp.full((T, Bp), -1, jnp.int32).at[:, :B].set(token_ids.T)
    ids_tm = ids_tm.reshape(T * Bp, 1)

    kernel = functools.partial(_fasthemal_kernel, T=T, Bp=Bp, B=B, H=H)
    out = pl.pallas_call(
        kernel,
        out_shape=jax.ShapeDtypeStruct((1, C), jnp.float32),
        in_specs=[_VMEM] * 10,
        out_specs=_VMEM,
    )(ids_tm,
      params["embedding"],
      params["tok_wih"], params["tok_whh"], params["tok_b"],
      params["ins_wih"], params["ins_whh"], params["ins_b"],
      params["lin_w_t"], params["lin_b"])
    return jnp.squeeze(out)


# --------------------------- parameter construction --------------------------

def _uniform(key, shape, bound):
    return jax.random.uniform(key, shape, jnp.float32, minval=-bound, maxval=bound)


def init_params(key, dictsize, embedding_size, hidden_size, num_classes):
    ks = jax.random.split(key, 11)
    H, E, C = hidden_size, embedding_size, num_classes
    b_lstm = 1.0 / math.sqrt(H)
    b_lin = 1.0 / math.sqrt(H)
    return {
        # nn.Embedding(dictsize, E)
        "embedding": jax.random.normal(ks[0], (dictsize, E), jnp.float32),
        # token_rnn = nn.LSTM(E, H): gates [i|f|g|o] concatenated on lanes
        "tok_wih": _uniform(ks[1], (E, 4 * H), b_lstm),
        "tok_whh": _uniform(ks[2], (H, 4 * H), b_lstm),
        "tok_b": (_uniform(ks[3], (1, 4 * H), b_lstm)
                  + _uniform(ks[4], (1, 4 * H), b_lstm)),
        # instr_rnn = nn.LSTM(H, H)
        "ins_wih": _uniform(ks[5], (H, 4 * H), b_lstm),
        "ins_whh": _uniform(ks[6], (H, 4 * H), b_lstm),
        "ins_b": (_uniform(ks[7], (1, 4 * H), b_lstm)
                  + _uniform(ks[8], (1, 4 * H), b_lstm)),
        # linear = nn.Linear(H, C)
        "lin_w_t": _uniform(ks[9], (H, C), b_lin),
        "lin_b": _uniform(ks[10], (1, C), b_lin),
    }


# ---------------------------- pure-JAX reference -----------------------------

def _reference_forward(params, token_ids):
    H = params["tok_whh"].shape[0]
    emb = params["embedding"][token_ids]                      # (B, T, E)

    def lstm(xs, wih, whh, b):                                # xs: (S, N, in)
        N = xs.shape[1]
        h = jnp.zeros((N, H), jnp.float32)
        c = jnp.zeros((N, H), jnp.float32)
        for s in range(xs.shape[0]):
            g = xs[s] @ wih + h @ whh + b
            gi = jax.nn.sigmoid(g[:, 0 * H:1 * H])
            gf = jax.nn.sigmoid(g[:, 1 * H:2 * H])
            gg = jnp.tanh(g[:, 2 * H:3 * H])
            go = jax.nn.sigmoid(g[:, 3 * H:4 * H])
            c = gf * c + gi * gg
            h = go * jnp.tanh(c)
        return h

    tok_h = lstm(jnp.transpose(emb, (1, 0, 2)),
                 params["tok_wih"], params["tok_whh"], params["tok_b"])   # (B, H)
    ins_h = lstm(tok_h[:, None, :],
                 params["ins_wih"], params["ins_whh"], params["ins_b"])   # (1, H)
    return jnp.squeeze(ins_h @ params["lin_w_t"] + params["lin_b"])


# ----------------------------------- main -------------------------------------

if __name__ == "__main__":
    embedding_size = 32
    hidden_size = 32
    num_classes = 1
    dictsize = 64
    num_instrs = 4        # number of "instructions" (len(item.x))
    tokens_per_instr = 8

    key = jax.random.PRNGKey(0)
    k_params, k_tokens = jax.random.split(key)

    params = init_params(k_params, dictsize, embedding_size, hidden_size, num_classes)
    token_ids = jax.random.randint(
        k_tokens, (num_instrs, tokens_per_instr), 0, dictsize, dtype=jnp.int32
    )

    fwd = jax.jit(fasthemal_forward)
    result = fwd(params, token_ids)
    jax.block_until_ready(result)

    ref = _reference_forward(params, token_ids)
    if not bool(jnp.allclose(result, ref, rtol=1e-3, atol=1e-3)):
        raise AssertionError(f"kernel/reference mismatch: {result} vs {ref}")

    print("KERNEL_OK")
</pallas_src>

<mosaic_0001>
module attributes {stable_mosaic.version = 11 : i64} {
  func.func @_fasthemal_kernel(%arg0: memref<64x1xi32, #tpu.memory_space<vmem>>, %arg1: memref<64x32xf32, #tpu.memory_space<vmem>>, %arg2: memref<32x128xf32, #tpu.memory_space<vmem>>, %arg3: memref<32x128xf32, #tpu.memory_space<vmem>>, %arg4: memref<1x128xf32, #tpu.memory_space<vmem>>, %arg5: memref<32x128xf32, #tpu.memory_space<vmem>>, %arg6: memref<32x128xf32, #tpu.memory_space<vmem>>, %arg7: memref<1x128xf32, #tpu.memory_space<vmem>>, %arg8: memref<32x1xf32, #tpu.memory_space<vmem>>, %arg9: memref<1x1xf32, #tpu.memory_space<vmem>>, %arg10: memref<1x1xf32, #tpu.memory_space<vmem>>) attributes {dimension_semantics = [], scalar_prefetch = 0 : i64, scratch_operands = 0 : i64, tpu.core_type = #tpu.core_type<tc>} {
    %c0 = arith.constant 0 : index
    %c0_0 = arith.constant 0 : index
    %0 = vector.load %arg0[%c0, %c0_0] : memref<64x1xi32, #tpu.memory_space<vmem>>, vector<64x1xi32>
    %1 = tpu.iota {dimensions = array<i32: 1>} : vector<64x64xi32>
    %2 = vector.broadcast %0 : vector<64x1xi32> to vector<64x64xi32>
    %3 = arith.cmpi eq, %1, %2 : vector<64x64xi32>
    %4 = arith.extui %3 : vector<64x64xi1> to vector<64x64xi32>
    %5 = arith.sitofp %4 : vector<64x64xi32> to vector<64x64xf32>
    %c0_1 = arith.constant 0 : index
    %c0_2 = arith.constant 0 : index
    %6 = vector.load %arg1[%c0_1, %c0_2] : memref<64x32xf32, #tpu.memory_space<vmem>>, vector<64x32xf32>
    %cst = arith.constant dense<0.000000e+00> : vector<64x32xf32>
    %7 = tpu.matmul %5, %6, %cst {dimension_numbers = #tpu.dot_dimension_numbers<[1], [0], [0], [1], [0, 0, 1, 1], [], []>} : vector<64x64xf32>, vector<64x32xf32>, vector<64x32xf32> -> vector<64x32xf32>
    %c0_3 = arith.constant 0 : index
    %c0_4 = arith.constant 0 : index
    %8 = vector.load %arg2[%c0_3, %c0_4] : memref<32x128xf32, #tpu.memory_space<vmem>>, vector<32x128xf32>
    %cst_5 = arith.constant dense<0.000000e+00> : vector<64x128xf32>
    %9 = tpu.matmul %7, %8, %cst_5 {dimension_numbers = #tpu.dot_dimension_numbers<[1], [0], [0], [1], [0, 0, 1, 1], [], []>} : vector<64x32xf32>, vector<32x128xf32>, vector<64x128xf32> -> vector<64x128xf32>
    %c0_6 = arith.constant 0 : index
    %c0_7 = arith.constant 0 : index
    %10 = vector.load %arg4[%c0_6, %c0_7] : memref<1x128xf32, #tpu.memory_space<vmem>>, vector<1x128xf32>
    %11 = vector.broadcast %10 : vector<1x128xf32> to vector<64x128xf32>
    %12 = arith.addf %9, %11 : vector<64x128xf32>
    %c0_8 = arith.constant 0 : index
    %c0_9 = arith.constant 0 : index
    %13 = vector.load %arg3[%c0_8, %c0_9] : memref<32x128xf32, #tpu.memory_space<vmem>>, vector<32x128xf32>
    %cst_10 = arith.constant 0.000000e+00 : f32
    %14 = vector.broadcast %cst_10 : f32 to vector<8x32xf32>
    %cst_11 = arith.constant 0.000000e+00 : f32
    %15 = vector.broadcast %cst_11 : f32 to vector<8x32xf32>
    %16 = vector.extract_strided_slice %12 {offsets = [0, 0], sizes = [8, 128], strides = [1, 1]} : vector<64x128xf32> to vector<8x128xf32>
    %cst_12 = arith.constant dense<0.000000e+00> : vector<8x128xf32>
    %17 = tpu.matmul %14, %13, %cst_12 {dimension_numbers = #tpu.dot_dimension_numbers<[1], [0], [0], [1], [0, 0, 1, 1], [], []>} : vector<8x32xf32>, vector<32x128xf32>, vector<8x128xf32> -> vector<8x128xf32>
    %18 = arith.addf %16, %17 : vector<8x128xf32>
    %19 = arith.negf %18 : vector<8x128xf32>
    %20 = math.exp %19 : vector<8x128xf32>
    %cst_13 = arith.constant 1.000000e+00 : f32
    %21 = vector.broadcast %cst_13 : f32 to vector<8x128xf32>
    %22 = arith.addf %21, %20 : vector<8x128xf32>
    %23 = arith.divf %21, %22 : vector<8x128xf32>
    %24 = math.tanh %18 : vector<8x128xf32>
    %25 = vector.extract_strided_slice %23 {offsets = [0, 0], sizes = [8, 32], strides = [1, 1]} : vector<8x128xf32> to vector<8x32xf32>
    %26 = vector.extract_strided_slice %23 {offsets = [0, 32], sizes = [8, 32], strides = [1, 1]} : vector<8x128xf32> to vector<8x32xf32>
    %27 = vector.extract_strided_slice %24 {offsets = [0, 64], sizes = [8, 32], strides = [1, 1]} : vector<8x128xf32> to vector<8x32xf32>
    %28 = vector.extract_strided_slice %23 {offsets = [0, 96], sizes = [8, 32], strides = [1, 1]} : vector<8x128xf32> to vector<8x32xf32>
    %29 = arith.mulf %26, %15 : vector<8x32xf32>
    %30 = arith.mulf %25, %27 : vector<8x32xf32>
    %31 = arith.addf %29, %30 : vector<8x32xf32>
    %32 = math.tanh %31 : vector<8x32xf32>
    %33 = arith.mulf %28, %32 : vector<8x32xf32>
    %34 = vector.extract_strided_slice %12 {offsets = [8, 0], sizes = [8, 128], strides = [1, 1]} : vector<64x128xf32> to vector<8x128xf32>
    %cst_14 = arith.constant dense<0.000000e+00> : vector<8x128xf32>
    %35 = tpu.matmul %33, %13, %cst_14 {dimension_numbers = #tpu.dot_dimension_numbers<[1], [0], [0], [1], [0, 0, 1, 1], [], []>} : vector<8x32xf32>, vector<32x128xf32>, vector<8x128xf32> -> vector<8x128xf32>
    %36 = arith.addf %34, %35 : vector<8x128xf32>
    %37 = arith.negf %36 : vector<8x128xf32>
    %38 = math.exp %37 : vector<8x128xf32>
    %cst_15 = arith.constant 1.000000e+00 : f32
    %39 = vector.broadcast %cst_15 : f32 to vector<8x128xf32>
    %40 = arith.addf %39, %38 : vector<8x128xf32>
    %41 = arith.divf %39, %40 : vector<8x128xf32>
    %42 = math.tanh %36 : vector<8x128xf32>
    %43 = vector.extract_strided_slice %41 {offsets = [0, 0], sizes = [8, 32], strides = [1, 1]} : vector<8x128xf32> to vector<8x32xf32>
    %44 = vector.extract_strided_slice %41 {offsets = [0, 32], sizes = [8, 32], strides = [1, 1]} : vector<8x128xf32> to vector<8x32xf32>
    %45 = vector.extract_strided_slice %42 {offsets = [0, 64], sizes = [8, 32], strides = [1, 1]} : vector<8x128xf32> to vector<8x32xf32>
    %46 = vector.extract_strided_slice %41 {offsets = [0, 96], sizes = [8, 32], strides = [1, 1]} : vector<8x128xf32> to vector<8x32xf32>
    %47 = arith.mulf %44, %31 : vector<8x32xf32>
    %48 = arith.mulf %43, %45 : vector<8x32xf32>
    %49 = arith.addf %47, %48 : vector<8x32xf32>
    %50 = math.tanh %49 : vector<8x32xf32>
    %51 = arith.mulf %46, %50 : vector<8x32xf32>
    %52 = vector.extract_strided_slice %12 {offsets = [16, 0], sizes = [8, 128], strides = [1, 1]} : vector<64x128xf32> to vector<8x128xf32>
    %cst_16 = arith.constant dense<0.000000e+00> : vector<8x128xf32>
    %53 = tpu.matmul %51, %13, %cst_16 {dimension_numbers = #tpu.dot_dimension_numbers<[1], [0], [0], [1], [0, 0, 1, 1], [], []>} : vector<8x32xf32>, vector<32x128xf32>, vector<8x128xf32> -> vector<8x128xf32>
    %54 = arith.addf %52, %53 : vector<8x128xf32>
    %55 = arith.negf %54 : vector<8x128xf32>
    %56 = math.exp %55 : vector<8x128xf32>
    %cst_17 = arith.constant 1.000000e+00 : f32
    %57 = vector.broadcast %cst_17 : f32 to vector<8x128xf32>
    %58 = arith.addf %57, %56 : vector<8x128xf32>
    %59 = arith.divf %57, %58 : vector<8x128xf32>
    %60 = math.tanh %54 : vector<8x128xf32>
    %61 = vector.extract_strided_slice %59 {offsets = [0, 0], sizes = [8, 32], strides = [1, 1]} : vector<8x128xf32> to vector<8x32xf32>
    %62 = vector.extract_strided_slice %59 {offsets = [0, 32], sizes = [8, 32], strides = [1, 1]} : vector<8x128xf32> to vector<8x32xf32>
    %63 = vector.extract_strided_slice %60 {offsets = [0, 64], sizes = [8, 32], strides = [1, 1]} : vector<8x128xf32> to vector<8x32xf32>
    %64 = vector.extract_strided_slice %59 {offsets = [0, 96], sizes = [8, 32], strides = [1, 1]} : vector<8x128xf32> to vector<8x32xf32>
    %65 = arith.mulf %62, %49 : vector<8x32xf32>
    %66 = arith.mulf %61, %63 : vector<8x32xf32>
    %67 = arith.addf %65, %66 : vector<8x32xf32>
    %68 = math.tanh %67 : vector<8x32xf32>
    %69 = arith.mulf %64, %68 : vector<8x32xf32>
    %70 = vector.extract_strided_slice %12 {offsets = [24, 0], sizes = [8, 128], strides = [1, 1]} : vector<64x128xf32> to vector<8x128xf32>
    %cst_18 = arith.constant dense<0.000000e+00> : vector<8x128xf32>
    %71 = tpu.matmul %69, %13, %cst_18 {dimension_numbers = #tpu.dot_dimension_numbers<[1], [0], [0], [1], [0, 0, 1, 1], [], []>} : vector<8x32xf32>, vector<32x128xf32>, vector<8x128xf32> -> vector<8x128xf32>
    %72 = arith.addf %70, %71 : vector<8x128xf32>
    %73 = arith.negf %72 : vector<8x128xf32>
    %74 = math.exp %73 : vector<8x128xf32>
    %cst_19 = arith.constant 1.000000e+00 : f32
    %75 = vector.broadcast %cst_19 : f32 to vector<8x128xf32>
    %76 = arith.addf %75, %74 : vector<8x128xf32>
    %77 = arith.divf %75, %76 : vector<8x128xf32>
    %78 = math.tanh %72 : vector<8x128xf32>
    %79 = vector.extract_strided_slice %77 {offsets = [0, 0], sizes = [8, 32], strides = [1, 1]} : vector<8x128xf32> to vector<8x32xf32>
    %80 = vector.extract_strided_slice %77 {offsets = [0, 32], sizes = [8, 32], strides = [1, 1]} : vector<8x128xf32> to vector<8x32xf32>
    %81 = vector.extract_strided_slice %78 {offsets = [0, 64], sizes = [8, 32], strides = [1, 1]} : vector<8x128xf32> to vector<8x32xf32>
    %82 = vector.extract_strided_slice %77 {offsets = [0, 96], sizes = [8, 32], strides = [1, 1]} : vector<8x128xf32> to vector<8x32xf32>
    %83 = arith.mulf %80, %67 : vector<8x32xf32>
    %84 = arith.mulf %79, %81 : vector<8x32xf32>
    %85 = arith.addf %83, %84 : vector<8x32xf32>
    %86 = math.tanh %85 : vector<8x32xf32>
    %87 = arith.mulf %82, %86 : vector<8x32xf32>
    %88 = vector.extract_strided_slice %12 {offsets = [32, 0], sizes = [8, 128], strides = [1, 1]} : vector<64x128xf32> to vector<8x128xf32>
    %cst_20 = arith.constant dense<0.000000e+00> : vector<8x128xf32>
    %89 = tpu.matmul %87, %13, %cst_20 {dimension_numbers = #tpu.dot_dimension_numbers<[1], [0], [0], [1], [0, 0, 1, 1], [], []>} : vector<8x32xf32>, vector<32x128xf32>, vector<8x128xf32> -> vector<8x128xf32>
    %90 = arith.addf %88, %89 : vector<8x128xf32>
    %91 = arith.negf %90 : vector<8x128xf32>
    %92 = math.exp %91 : vector<8x128xf32>
    %cst_21 = arith.constant 1.000000e+00 : f32
    %93 = vector.broadcast %cst_21 : f32 to vector<8x128xf32>
    %94 = arith.addf %93, %92 : vector<8x128xf32>
    %95 = arith.divf %93, %94 : vector<8x128xf32>
    %96 = math.tanh %90 : vector<8x128xf32>
    %97 = vector.extract_strided_slice %95 {offsets = [0, 0], sizes = [8, 32], strides = [1, 1]} : vector<8x128xf32> to vector<8x32xf32>
    %98 = vector.extract_strided_slice %95 {offsets = [0, 32], sizes = [8, 32], strides = [1, 1]} : vector<8x128xf32> to vector<8x32xf32>
    %99 = vector.extract_strided_slice %96 {offsets = [0, 64], sizes = [8, 32], strides = [1, 1]} : vector<8x128xf32> to vector<8x32xf32>
    %100 = vector.extract_strided_slice %95 {offsets = [0, 96], sizes = [8, 32], strides = [1, 1]} : vector<8x128xf32> to vector<8x32xf32>
    %101 = arith.mulf %98, %85 : vector<8x32xf32>
    %102 = arith.mulf %97, %99 : vector<8x32xf32>
    %103 = arith.addf %101, %102 : vector<8x32xf32>
    %104 = math.tanh %103 : vector<8x32xf32>
    %105 = arith.mulf %100, %104 : vector<8x32xf32>
    %106 = vector.extract_strided_slice %12 {offsets = [40, 0], sizes = [8, 128], strides = [1, 1]} : vector<64x128xf32> to vector<8x128xf32>
    %cst_22 = arith.constant dense<0.000000e+00> : vector<8x128xf32>
    %107 = tpu.matmul %105, %13, %cst_22 {dimension_numbers = #tpu.dot_dimension_numbers<[1], [0], [0], [1], [0, 0, 1, 1], [], []>} : vector<8x32xf32>, vector<32x128xf32>, vector<8x128xf32> -> vector<8x128xf32>
    %108 = arith.addf %106, %107 : vector<8x128xf32>
    %109 = arith.negf %108 : vector<8x128xf32>
    %110 = math.exp %109 : vector<8x128xf32>
    %cst_23 = arith.constant 1.000000e+00 : f32
    %111 = vector.broadcast %cst_23 : f32 to vector<8x128xf32>
    %112 = arith.addf %111, %110 : vector<8x128xf32>
    %113 = arith.divf %111, %112 : vector<8x128xf32>
    %114 = math.tanh %108 : vector<8x128xf32>
    %115 = vector.extract_strided_slice %113 {offsets = [0, 0], sizes = [8, 32], strides = [1, 1]} : vector<8x128xf32> to vector<8x32xf32>
    %116 = vector.extract_strided_slice %113 {offsets = [0, 32], sizes = [8, 32], strides = [1, 1]} : vector<8x128xf32> to vector<8x32xf32>
    %117 = vector.extract_strided_slice %114 {offsets = [0, 64], sizes = [8, 32], strides = [1, 1]} : vector<8x128xf32> to vector<8x32xf32>
    %118 = vector.extract_strided_slice %113 {offsets = [0, 96], sizes = [8, 32], strides = [1, 1]} : vector<8x128xf32> to vector<8x32xf32>
    %119 = arith.mulf %116, %103 : vector<8x32xf32>
    %120 = arith.mulf %115, %117 : vector<8x32xf32>
    %121 = arith.addf %119, %120 : vector<8x32xf32>
    %122 = math.tanh %121 : vector<8x32xf32>
    %123 = arith.mulf %118, %122 : vector<8x32xf32>
    %124 = vector.extract_strided_slice %12 {offsets = [48, 0], sizes = [8, 128], strides = [1, 1]} : vector<64x128xf32> to vector<8x128xf32>
    %cst_24 = arith.constant dense<0.000000e+00> : vector<8x128xf32>
    %125 = tpu.matmul %123, %13, %cst_24 {dimension_numbers = #tpu.dot_dimension_numbers<[1], [0], [0], [1], [0, 0, 1, 1], [], []>} : vector<8x32xf32>, vector<32x128xf32>, vector<8x128xf32> -> vector<8x128xf32>
    %126 = arith.addf %124, %125 : vector<8x128xf32>
    %127 = arith.negf %126 : vector<8x128xf32>
    %128 = math.exp %127 : vector<8x128xf32>
    %cst_25 = arith.constant 1.000000e+00 : f32
    %129 = vector.broadcast %cst_25 : f32 to vector<8x128xf32>
    %130 = arith.addf %129, %128 : vector<8x128xf32>
    %131 = arith.divf %129, %130 : vector<8x128xf32>
    %132 = math.tanh %126 : vector<8x128xf32>
    %133 = vector.extract_strided_slice %131 {offsets = [0, 0], sizes = [8, 32], strides = [1, 1]} : vector<8x128xf32> to vector<8x32xf32>
    %134 = vector.extract_strided_slice %131 {offsets = [0, 32], sizes = [8, 32], strides = [1, 1]} : vector<8x128xf32> to vector<8x32xf32>
    %135 = vector.extract_strided_slice %132 {offsets = [0, 64], sizes = [8, 32], strides = [1, 1]} : vector<8x128xf32> to vector<8x32xf32>
    %136 = vector.extract_strided_slice %131 {offsets = [0, 96], sizes = [8, 32], strides = [1, 1]} : vector<8x128xf32> to vector<8x32xf32>
    %137 = arith.mulf %134, %121 : vector<8x32xf32>
    %138 = arith.mulf %133, %135 : vector<8x32xf32>
    %139 = arith.addf %137, %138 : vector<8x32xf32>
    %140 = math.tanh %139 : vector<8x32xf32>
    %141 = arith.mulf %136, %140 : vector<8x32xf32>
    %142 = vector.extract_strided_slice %12 {offsets = [56, 0], sizes = [8, 128], strides = [1, 1]} : vector<64x128xf32> to vector<8x128xf32>
    %cst_26 = arith.constant dense<0.000000e+00> : vector<8x128xf32>
    %143 = tpu.matmul %141, %13, %cst_26 {dimension_numbers = #tpu.dot_dimension_numbers<[1], [0], [0], [1], [0, 0, 1, 1], [], []>} : vector<8x32xf32>, vector<32x128xf32>, vector<8x128xf32> -> vector<8x128xf32>
    %144 = arith.addf %142, %143 : vector<8x128xf32>
    %145 = arith.negf %144 : vector<8x128xf32>
    %146 = math.exp %145 : vector<8x128xf32>
    %cst_27 = arith.constant 1.000000e+00 : f32
    %147 = vector.broadcast %cst_27 : f32 to vector<8x128xf32>
    %148 = arith.addf %147, %146 : vector<8x128xf32>
    %149 = arith.divf %147, %148 : vector<8x128xf32>
    %150 = math.tanh %144 : vector<8x128xf32>
    %151 = vector.extract_strided_slice %149 {offsets = [0, 0], sizes = [8, 32], strides = [1, 1]} : vector<8x128xf32> to vector<8x32xf32>
    %152 = vector.extract_strided_slice %149 {offsets = [0, 32], sizes = [8, 32], strides = [1, 1]} : vector<8x128xf32> to vector<8x32xf32>
    %153 = vector.extract_strided_slice %150 {offsets = [0, 64], sizes = [8, 32], strides = [1, 1]} : vector<8x128xf32> to vector<8x32xf32>
    %154 = vector.extract_strided_slice %149 {offsets = [0, 96], sizes = [8, 32], strides = [1, 1]} : vector<8x128xf32> to vector<8x32xf32>
    %155 = arith.mulf %152, %139 : vector<8x32xf32>
    %156 = arith.mulf %151, %153 : vector<8x32xf32>
    %157 = arith.addf %155, %156 : vector<8x32xf32>
    %158 = math.tanh %157 : vector<8x32xf32>
    %159 = arith.mulf %154, %158 : vector<8x32xf32>
    %c0_28 = arith.constant 0 : index
    %c0_29 = arith.constant 0 : index
    %160 = vector.load %arg5[%c0_28, %c0_29] : memref<32x128xf32, #tpu.memory_space<vmem>>, vector<32x128xf32>
    %cst_30 = arith.constant dense<0.000000e+00> : vector<8x128xf32>
    %161 = tpu.matmul %159, %160, %cst_30 {dimension_numbers = #tpu.dot_dimension_numbers<[1], [0], [0], [1], [0, 0, 1, 1], [], []>} : vector<8x32xf32>, vector<32x128xf32>, vector<8x128xf32> -> vector<8x128xf32>
    %c0_31 = arith.constant 0 : index
    %c0_32 = arith.constant 0 : index
    %162 = vector.load %arg7[%c0_31, %c0_32] : memref<1x128xf32, #tpu.memory_space<vmem>>, vector<1x128xf32>
    %163 = vector.broadcast %162 : vector<1x128xf32> to vector<8x128xf32>
    %164 = arith.addf %161, %163 : vector<8x128xf32>
    %c0_33 = arith.constant 0 : index
    %c0_34 = arith.constant 0 : index
    %165 = vector.load %arg6[%c0_33, %c0_34] : memref<32x128xf32, #tpu.memory_space<vmem>>, vector<32x128xf32>
    %cst_35 = arith.constant 0.000000e+00 : f32
    %166 = vector.broadcast %cst_35 : f32 to vector<1x32xf32>
    %cst_36 = arith.constant 0.000000e+00 : f32
    %167 = vector.broadcast %cst_36 : f32 to vector<1x32xf32>
    %168 = vector.extract_strided_slice %164 {offsets = [0, 0], sizes = [1, 128], strides = [1, 1]} : vector<8x128xf32> to vector<1x128xf32>
    %cst_37 = arith.constant dense<0.000000e+00> : vector<1x128xf32>
    %169 = tpu.matmul %166, %165, %cst_37 {dimension_numbers = #tpu.dot_dimension_numbers<[1], [0], [0], [1], [0, 0, 1, 1], [], []>} : vector<1x32xf32>, vector<32x128xf32>, vector<1x128xf32> -> vector<1x128xf32>
    %170 = arith.addf %168, %169 : vector<1x128xf32>
    %171 = arith.negf %170 : vector<1x128xf32>
    %172 = math.exp %171 : vector<1x128xf32>
    %cst_38 = arith.constant 1.000000e+00 : f32
    %173 = vector.broadcast %cst_38 : f32 to vector<1x128xf32>
    %174 = arith.addf %173, %172 : vector<1x128xf32>
    %175 = arith.divf %173, %174 : vector<1x128xf32>
    %176 = math.tanh %170 : vector<1x128xf32>
    %177 = vector.extract_strided_slice %175 {offsets = [0, 0], sizes = [1, 32], strides = [1, 1]} : vector<1x128xf32> to vector<1x32xf32>
    %178 = vector.extract_strided_slice %175 {offsets = [0, 32], sizes = [1, 32], strides = [1, 1]} : vector<1x128xf32> to vector<1x32xf32>
    %179 = vector.extract_strided_slice %176 {offsets = [0, 64], sizes = [1, 32], strides = [1, 1]} : vector<1x128xf32> to vector<1x32xf32>
    %180 = vector.extract_strided_slice %175 {offsets = [0, 96], sizes = [1, 32], strides = [1, 1]} : vector<1x128xf32> to vector<1x32xf32>
    %181 = arith.mulf %178, %167 : vector<1x32xf32>
    %182 = arith.mulf %177, %179 : vector<1x32xf32>
    %183 = arith.addf %181, %182 : vector<1x32xf32>
    %184 = math.tanh %183 : vector<1x32xf32>
    %185 = arith.mulf %180, %184 : vector<1x32xf32>
    %186 = vector.extract_strided_slice %164 {offsets = [1, 0], sizes = [1, 128], strides = [1, 1]} : vector<8x128xf32> to vector<1x128xf32>
    %cst_39 = arith.constant dense<0.000000e+00> : vector<1x128xf32>
    %187 = tpu.matmul %185, %165, %cst_39 {dimension_numbers = #tpu.dot_dimension_numbers<[1], [0], [0], [1], [0, 0, 1, 1], [], []>} : vector<1x32xf32>, vector<32x128xf32>, vector<1x128xf32> -> vector<1x128xf32>
    %188 = arith.addf %186, %187 : vector<1x128xf32>
    %189 = arith.negf %188 : vector<1x128xf32>
    %190 = math.exp %189 : vector<1x128xf32>
    %cst_40 = arith.constant 1.000000e+00 : f32
    %191 = vector.broadcast %cst_40 : f32 to vector<1x128xf32>
    %192 = arith.addf %191, %190 : vector<1x128xf32>
    %193 = arith.divf %191, %192 : vector<1x128xf32>
    %194 = math.tanh %188 : vector<1x128xf32>
    %195 = vector.extract_strided_slice %193 {offsets = [0, 0], sizes = [1, 32], strides = [1, 1]} : vector<1x128xf32> to vector<1x32xf32>
    %196 = vector.extract_strided_slice %193 {offsets = [0, 32], sizes = [1, 32], strides = [1, 1]} : vector<1x128xf32> to vector<1x32xf32>
    %197 = vector.extract_strided_slice %194 {offsets = [0, 64], sizes = [1, 32], strides = [1, 1]} : vector<1x128xf32> to vector<1x32xf32>
    %198 = vector.extract_strided_slice %193 {offsets = [0, 96], sizes = [1, 32], strides = [1, 1]} : vector<1x128xf32> to vector<1x32xf32>
    %199 = arith.mulf %196, %183 : vector<1x32xf32>
    %200 = arith.mulf %195, %197 : vector<1x32xf32>
    %201 = arith.addf %199, %200 : vector<1x32xf32>
    %202 = math.tanh %201 : vector<1x32xf32>
    %203 = arith.mulf %198, %202 : vector<1x32xf32>
    %204 = vector.extract_strided_slice %164 {offsets = [2, 0], sizes = [1, 128], strides = [1, 1]} : vector<8x128xf32> to vector<1x128xf32>
    %cst_41 = arith.constant dense<0.000000e+00> : vector<1x128xf32>
    %205 = tpu.matmul %203, %165, %cst_41 {dimension_numbers = #tpu.dot_dimension_numbers<[1], [0], [0], [1], [0, 0, 1, 1], [], []>} : vector<1x32xf32>, vector<32x128xf32>, vector<1x128xf32> -> vector<1x128xf32>
    %206 = arith.addf %204, %205 : vector<1x128xf32>
    %207 = arith.negf %206 : vector<1x128xf32>
    %208 = math.exp %207 : vector<1x128xf32>
    %cst_42 = arith.constant 1.000000e+00 : f32
    %209 = vector.broadcast %cst_42 : f32 to vector<1x128xf32>
    %210 = arith.addf %209, %208 : vector<1x128xf32>
    %211 = arith.divf %209, %210 : vector<1x128xf32>
    %212 = math.tanh %206 : vector<1x128xf32>
    %213 = vector.extract_strided_slice %211 {offsets = [0, 0], sizes = [1, 32], strides = [1, 1]} : vector<1x128xf32> to vector<1x32xf32>
    %214 = vector.extract_strided_slice %211 {offsets = [0, 32], sizes = [1, 32], strides = [1, 1]} : vector<1x128xf32> to vector<1x32xf32>
    %215 = vector.extract_strided_slice %212 {offsets = [0, 64], sizes = [1, 32], strides = [1, 1]} : vector<1x128xf32> to vector<1x32xf32>
    %216 = vector.extract_strided_slice %211 {offsets = [0, 96], sizes = [1, 32], strides = [1, 1]} : vector<1x128xf32> to vector<1x32xf32>
    %217 = arith.mulf %214, %201 : vector<1x32xf32>
    %218 = arith.mulf %213, %215 : vector<1x32xf32>
    %219 = arith.addf %217, %218 : vector<1x32xf32>
    %220 = math.tanh %219 : vector<1x32xf32>
    %221 = arith.mulf %216, %220 : vector<1x32xf32>
    %222 = vector.extract_strided_slice %164 {offsets = [3, 0], sizes = [1, 128], strides = [1, 1]} : vector<8x128xf32> to vector<1x128xf32>
    %cst_43 = arith.constant dense<0.000000e+00> : vector<1x128xf32>
    %223 = tpu.matmul %221, %165, %cst_43 {dimension_numbers = #tpu.dot_dimension_numbers<[1], [0], [0], [1], [0, 0, 1, 1], [], []>} : vector<1x32xf32>, vector<32x128xf32>, vector<1x128xf32> -> vector<1x128xf32>
    %224 = arith.addf %222, %223 : vector<1x128xf32>
    %225 = arith.negf %224 : vector<1x128xf32>
    %226 = math.exp %225 : vector<1x128xf32>
    %cst_44 = arith.constant 1.000000e+00 : f32
    %227 = vector.broadcast %cst_44 : f32 to vector<1x128xf32>
    %228 = arith.addf %227, %226 : vector<1x128xf32>
    %229 = arith.divf %227, %228 : vector<1x128xf32>
    %230 = math.tanh %224 : vector<1x128xf32>
    %231 = vector.extract_strided_slice %229 {offsets = [0, 0], sizes = [1, 32], strides = [1, 1]} : vector<1x128xf32> to vector<1x32xf32>
    %232 = vector.extract_strided_slice %229 {offsets = [0, 32], sizes = [1, 32], strides = [1, 1]} : vector<1x128xf32> to vector<1x32xf32>
    %233 = vector.extract_strided_slice %230 {offsets = [0, 64], sizes = [1, 32], strides = [1, 1]} : vector<1x128xf32> to vector<1x32xf32>
    %234 = vector.extract_strided_slice %229 {offsets = [0, 96], sizes = [1, 32], strides = [1, 1]} : vector<1x128xf32> to vector<1x32xf32>
    %235 = arith.mulf %232, %219 : vector<1x32xf32>
    %236 = arith.mulf %231, %233 : vector<1x32xf32>
    %237 = arith.addf %235, %236 : vector<1x32xf32>
    %238 = math.tanh %237 : vector<1x32xf32>
    %239 = arith.mulf %234, %238 : vector<1x32xf32>
    %c0_45 = arith.constant 0 : index
    %c0_46 = arith.constant 0 : index
    %240 = vector.load %arg8[%c0_45, %c0_46] : memref<32x1xf32, #tpu.memory_space<vmem>>, vector<32x1xf32>
    %cst_47 = arith.constant dense<0.000000e+00> : vector<1x1xf32>
    %241 = tpu.matmul %239, %240, %cst_47 {dimension_numbers = #tpu.dot_dimension_numbers<[1], [0], [0], [1], [0, 0, 1, 1], [], []>} : vector<1x32xf32>, vector<32x1xf32>, vector<1x1xf32> -> vector<1x1xf32>
    %c0_48 = arith.constant 0 : index
    %c0_49 = arith.constant 0 : index
    %242 = vector.load %arg9[%c0_48, %c0_49] : memref<1x1xf32, #tpu.memory_space<vmem>>, vector<1x1xf32>
    %243 = arith.addf %241, %242 : vector<1x1xf32>
    %c0_50 = arith.constant 0 : index
    %c0_51 = arith.constant 0 : index
    %244 = vector.load %arg10[%c0_50, %c0_51] : memref<1x1xf32, #tpu.memory_space<vmem>>, vector<1x1xf32>
    tpu.vector_store %arg10[%c0_50, %c0_51], %243 {strides = array<i32>} : memref<1x1xf32, #tpu.memory_space<vmem>>, vector<1x1xf32>,
    return
  }
}

</mosaic_0001>

<bundles_post_ra>
// kernel: fasthemal_forward.1
= control target key start
LH: loop header
LB: loop body
LE: loop exit
PB: predicated region body
PF: predicated region fallthrough
CT: control target
= control target key end

     0   :  { %s2743_s0 = inlined_call_operand.vmem [shape: s32[64,1], index: 0, kind: input, shape index: {}]   ;;  %s2744_s1 = inlined_call_operand.vmem [shape: f32[64,32], index: 1, kind: input, shape index: {}]   ;;  %s2745_s2 = inlined_call_operand.vmem [shape: f32[32,128], index: 2, kind: input, shape index: {}]   ;;  %s2746_s3 = inlined_call_operand.vmem [shape: f32[32,128], index: 3, kind: input, shape index: {}]   ;;  %s2747_s4 = inlined_call_operand.vmem [shape: f32[1,128], index: 4, kind: input, shape index: {}]   ;;  %s2748_s5 = inlined_call_operand.vmem [shape: f32[32,128], index: 5, kind: input, shape index: {}]   ;;  %s2749_s6 = inlined_call_operand.vmem [shape: f32[32,128], index: 6, kind: input, shape index: {}]   ;;  %s2750_s7 = inlined_call_operand.vmem [shape: f32[1,128], index: 7, kind: input, shape index: {}]   ;;  %s2751_s8 = inlined_call_operand.vmem [shape: f32[32,1], index: 8, kind: input, shape index: {}]   ;;  %s2752_s9 = inlined_call_operand.<no memory space> [shape: f32[1,1], index: 9, kind: input, shape index: {}]   ;;  %s2753_s10 = inlined_call_operand.hbm [shape: f32[1,1], index: 10, kind: output, shape index: {}]  }
   0x1   :  { %v15_v0 = vstv %s2752_s9 }
   0x2   :  { %16 = vst [vmem:[#allocation2] sm:$0x1] %v15_v0 }
   0x3   :  { %v40_v1 = vld [vmem:[%s2743_s0 + $0x10] sm:$0xff]  ;;  %v38_v2 = vld [vmem:[%s2743_s0] sm:$0xff]  ;;  %v2366_v3 = vmov 0   ;;  %v41_v4 = vld [vmem:[%s2743_s0 + $0x18] sm:$0xff] }
   0x4   :  { %2245 = vset.pattern.permute.xlu1 %v2366_v3  ;;  %2244 = vset.pattern.permute.xlu0 %v2366_v3  ;;  %v39_v5 = vld [vmem:[%s2743_s0 + $0x8] sm:$0xff]  ;;  %v96_v6 = vld [vmem:[%s2744_s1] sm:$0xff]  ;;  %v98_v8 = vld [vmem:[%s2744_s1 + $0x10] sm:$0xff] }
   0x5   :  { %55 = vperm.xlu1 %2245, %v40_v1   ;;  %49 = vperm.xlu0 %2244, %v38_v2   ;;  %v97_v7 = vld [vmem:[%s2744_s1 + $0x8] sm:$0xff]  ;;  %v99_v9 = vld [vmem:[%s2744_s1 + $0x18] sm:$0xff] }
   0x6   :  { %v2129_v10 = vpack.c.bf16 %v97_v7, %v96_v6  ;;  %v2133_v11 = vpack.c.bf16 %v99_v9, %v98_v8 }
   0x7   :  { %17 = vsyncpa [#allocation4], 0  ;;  %v100_v12 = vld [vmem:[%s2744_s1 + $0x20] sm:$0xff]  ;;  %v101_v13 = vld [vmem:[%s2744_s1 + $0x28] sm:$0xff]  ;;  %v46_v28 = vlaneseq  ;;  %vm104_vm0 = vcmask 523264   ;;  %v2367_v32 = vmov 0.0  }
   0x8   :  { %v43_v14 = vld [vmem:[%s2743_s0 + $0x28] sm:$0xff]  ;;  %v42_v15 = vld [vmem:[%s2743_s0 + $0x20] sm:$0xff]  ;;  %2130 = vmatprep.subr.bf16.mxu0 %v2129_v10  ;;  %v2137_v16 = vpack.c.bf16 %v101_v13, %v100_v12  ;;  %v102_v17 = vld [vmem:[%s2744_s1 + $0x30] sm:$0xff]  ;;  %v2368_v47 = vmov 0.0|0.0   ;;  %vm2369_vm9 = vmmov 0   ;;  %vm245_vm10 = vcmask 261120  }
   0x9   :  { %58 = vperm.xlu1 %2245, %v41_v4   ;;  %52 = vperm.xlu0 %2244, %v39_v5   ;;  %v103_v18 = vld [vmem:[%s2744_s1 + $0x38] sm:$0xff]  ;;  %v44_v20 = vld [vmem:[%s2743_s0 + $0x30] sm:$0xff]  ;;  %v234_v22 = vld [vmem:[%s2745_s2] sm:$0xff]  ;;  %v47_v29 = vand.u32 127, %v46_v28  ;;  %s2371_s19 = smov 32   ;;  %s2372_s18 = smov [#allocation3]  }
   0xa   :  { %2132 = vmatpush3.bf16.msra.mxu0 %v2129_v10  ;;  %v45_v19 = vld [vmem:[%s2743_s0 + $0x38] sm:$0xff]  ;;  %v2141_v21 = vpack.c.bf16 %v103_v18, %v102_v17  ;;  %v235_v23 = vld [vmem:[%s2745_s2 + $0x8] sm:$0xff]  ;;  %v236_v24 = vld [vmem:[%s2745_s2 + $0x10] sm:$0xff]  ;;  %s1771_s20 = sshll.u32 %s2372_s18, 4  ;;  %vm1763_vm11 = vcmask 0   ;;  %s1772_s20 = int_to_ptr.vmem [resolvable:$true] %s1771_s20 }
   0xb   :  { %2134 = vmatprep.subr.bf16.mxu0 %v2133_v11  ;;  %v2145_v25 = vpack.c.bf16 %v235_v23, %v234_v22  ;;  %v237_v26 = vld [vmem:[%s2745_s2 + $0x18] sm:$0xff]  ;;  %v375_v48 = vld [vmem:[%s2746_s3] sm:$0xff]  ;;  %v376_v49 = vld [vmem:[%s2746_s3 + $0x8] sm:$0xff]  ;;  %p2347_p1 = scmp.lt.s32.totalorder %s1772_s20, %s1772_s20 }
   0xc   :  { %v2149_v27 = vpack.c.bf16 %v237_v26, %v236_v24  ;;  %v2515_v50 = vpack.c.bf16 %v376_v49, %v375_v48  ;;  %v377_v51 = vld [vmem:[%s2746_s3 + $0x10] sm:$0xff]  ;;  %v378_v52 = vld [vmem:[%s2746_s3 + $0x18] sm:$0xff]  ;;  %v1795_v62 = vld [vmem:[%s2747_s4] ss:$0 sm:$0xff]  ;;  %s2370_s4 = smov 64  }
   0xd   :  { %64 = vperm.xlu1 %2245, %v43_v14   ;;  %61 = vperm.xlu0 %2244, %v42_v15   ;;  %v2525_v53 = vpack.c.bf16 %v378_v52, %v377_v51 }
   0xe   :  { %2136 = vmatpush3.bf16.msra.mxu0 %v2133_v11  ;;  %2146 = vmatprep.subr.bf16.mxu1 %v2145_v25 }
   0xf   :  { %2138 = vmatprep.subr.bf16.mxu0 %v2137_v16  ;;  %2148 = vmatpush3.bf16.msra.mxu1 %v2145_v25 }
  0x10   :  { %2150 = vmatprep.subr.bf16.mxu1 %v2149_v27 }
  0x11   :  { %70 = vperm.xlu1 %2245, %v45_v19   ;;  %67 = vperm.xlu0 %2244, %v44_v20  }
  0x12   :  { %2140 = vmatpush3.bf16.msra.mxu0 %v2137_v16 }
  0x13   :  { %2142 = vmatprep.subr.bf16.mxu0 %v2141_v21  ;;  %2152 = vmatpush3.bf16.msra.mxu1 %v2149_v27 }
  0x14   :  { %2153 = vmatprep.subr.bf16.mxu1 %v2368_v47 }
  0x16   :  { %2144 = vmatpush3.bf16.msra.mxu0 %v2141_v21 }
  0x17   :  { %2159 = vmatprep.subr.bf16.mxu0 %v2368_v47 }
  0x84   :  { %v56_v30 = vpop.permute.xlu1 %55  ;;  %v50_v31 = vpop.permute.xlu0 %49 }
  0x85   :  { %vm72_vm1 = vcmp.eq.s32.totalorder %v47_v29, %v50_v31  ;;  %vm74_vm2 = vcmp.eq.s32.totalorder %v47_v29, %v56_v30 }
  0x86   :  { %v1779_v33 = vsel %vm72_vm1, 1.0, %v2367_v32  ;;  %v1781_v36 = vsel %vm74_vm2, 1.0, %v2367_v32 }
  0x87   :  { %1943 = vmatprep.mubr.msk.f32.mxu0 %vm104_vm0, %v1779_v33 }
  0x88   :  { %v59_v34 = vpop.permute.xlu1 %58  ;;  %v53_v35 = vpop.permute.xlu0 %52 }
  0x89   :  { %vm73_vm3 = vcmp.eq.s32.totalorder %v47_v29, %v53_v35  ;;  %vm75_vm4 = vcmp.eq.s32.totalorder %v47_v29, %v59_v34 }
  0x8a   :  { %v1780_v37 = vsel %vm73_vm3, 1.0, %v2367_v32  ;;  %v1782_v40 = vsel %vm75_vm4, 1.0, %v2367_v32 }
  0x8b   :  { %1944 = vmatmul.mubr.msk.f32.vlgmr.msra.gmra.mrb[0].mxu0 %vm104_vm0, %v1780_v37 }
  0x8c   :  { %v65_v38 = vpop.permute.xlu1 %64  ;;  %1946 = vmatprep.mubr.msk.f32.mxu0 %vm104_vm0, %v1781_v36  ;;  %v62_v39 = vpop.permute.xlu0 %61  ;;  %2161 = vmatpush3.bf16.msra.mxu0 %v2515_v50 }
  0x8d   :  { %vm76_vm5 = vcmp.eq.s32.totalorder %v47_v29, %v62_v39  ;;  %vm77_vm6 = vcmp.eq.s32.totalorder %v47_v29, %v65_v38  ;;  %2162 = vmatprep.subr.bf16.mxu0 %v2368_v47 }
  0x8e   :  { %v1783_v41 = vsel %vm76_vm5, 1.0, %v2367_v32  ;;  %v1784_v44 = vsel %vm77_vm6, 1.0, %v2367_v32 }
  0x8f   :  { %1947 = vmatmul.mubr.msk.f32.gmra.mrb[2].mxu0 %vm104_vm0, %v1782_v40 }
  0x90   :  { %v71_v42 = vpop.permute.xlu1 %70  ;;  %1949 = vmatprep.mubr.msk.f32.mxu0 %vm104_vm0, %v1783_v41  ;;  %v68_v43 = vpop.permute.xlu0 %67  ;;  %2164 = vmatpush3.bf16.msra.mxu0 %v2525_v53 }
  0x91   :  { %vm78_vm7 = vcmp.eq.s32.totalorder %v47_v29, %v68_v43  ;;  %vm79_vm8 = vcmp.eq.s32.totalorder %v47_v29, %v71_v42  ;;  %2171 = vmatprep.subr.bf16.mxu0 %v2368_v47 }
  0x92   :  { %v1785_v45 = vsel %vm78_vm7, 1.0, %v2367_v32  ;;  %v1786_v46 = vsel %vm79_vm8, 1.0, %v2367_v32 }
  0x93   :  { %1950 = vmatmul.mubr.msk.f32.gmra.mrb[4].mxu0 %vm104_vm0, %v1784_v44 }
  0x94   :  { %1952 = vmatprep.mubr.msk.f32.mxu0 %vm104_vm0, %v1785_v45 }
  0x97   :  { %1953 = vmatmul.mubr.msk.f32.gmra.mrb[6].mxu0 %vm104_vm0, %v1786_v46 }
  0x98   :  { %1994 = vmatprep.mubr.msk.f32.mxu0 %vm2369_vm9, %v2367_v32 }
 0x15e   :  { %v1945_v54 = vpop.f32.mrb[0].mxu0 }
 0x15f   :  { %v195_v55 = vpop.f32.mrb[1].mxu0 }
 0x160   :  { %1963 = vmatprep.mubr.msk.f32.mxu1 %vm245_vm10, %v195_v55 }
 0x161   :  { %1964 = vmatmul.mubr.msk.f32.vlgmr.msra.gmra.mrb[0].mxu1 %vm245_vm10, %v1945_v54 }
 0x162   :  { %2155 = vmatpush3.bf16.msra.mxu1 %v2515_v50  ;;  %v1948_v56 = vpop.f32.mrb[2].mxu0 }
 0x163   :  { %v205_v57 = vpop.f32.mrb[3].mxu0  ;;  %2156 = vmatprep.subr.bf16.mxu1 %v2368_v47 }
 0x164   :  { %1966 = vmatprep.mubr.msk.f32.mxu1 %vm245_vm10, %v205_v57 }
 0x165   :  { %1967 = vmatmul.mubr.msk.f32.gmra.mrb[2].mxu1 %vm245_vm10, %v1948_v56 }
 0x166   :  { %v1951_v58 = vpop.f32.mrb[4].mxu0  ;;  %2158 = vmatpush3.bf16.msra.mxu1 %v2525_v53 }
 0x167   :  { %v215_v59 = vpop.f32.mrb[5].mxu0  ;;  %2165 = vmatprep.subr.bf16.mxu1 %v2368_v47 }
 0x168   :  { %1969 = vmatprep.mubr.msk.f32.mxu1 %vm245_vm10, %v215_v59 }
 0x169   :  { %1970 = vmatmul.mubr.msk.f32.gmra.mrb[4].mxu1 %vm245_vm10, %v1951_v58 }
 0x16a   :  { %v1954_v60 = vpop.f32.mrb[6].mxu0 }
 0x16b   :  { %v225_v61 = vpop.f32.mrb[7].mxu0 }
 0x16c   :  { %1972 = vmatprep.mubr.msk.f32.mxu1 %vm245_vm10, %v225_v61 }
 0x16d   :  { %1973 = vmatmul.mubr.msk.f32.gmra.mrb[6].mxu1 %vm245_vm10, %v1954_v60 }
 0x16e   :  { %1983 = vmatprep.mubr.msk.f32.mxu1 %vm2369_vm9, %v2367_v32 }
 0x171   :  { %1984 = vmatmul.mubr.f32.vlgmr.msra.gmra.mrb[8].mxu1 %v2367_v32 }
 0x172   :  { %2167 = vmatpush3.bf16.msra.mxu1 %v2515_v50  ;;  %2005 = vmatprep.mubr.msk.f32.mxu1 %vm2369_vm9, %v2367_v32 }
 0x173   :  { %2168 = vmatprep.subr.bf16.mxu1 %v2368_v47 }
 0x176   :  { %2170 = vmatpush3.bf16.msra.mxu1 %v2525_v53 }
 0x177   :  { %2177 = vmatprep.subr.bf16.mxu1 %v2368_v47 }
 0x234   :  { %v1965_v63 = vpop.f32.mrb[0].mxu1 }
 0x235   :  { %v342_v0 = vadd.f32 %v1965_v63, %v1795_v62  ;;  %v336_v1 = vpop.f32.mrb[1].mxu1 }
 0x236   :  { %v337_v14 = vadd.f32 %v1795_v62, %v336_v1 }
 0x238   :  { %v1968_v2 = vpop.f32.mrb[2].mxu1 }
 0x239   :  { %v2555_v3 = vadd.f32 %v1968_v2, %v1795_v62  ;;  %v346_v4 = vpop.f32.mrb[3].mxu1 }
 0x23a   :  { %v2557_v5 = vadd.f32 %v1795_v62, %v346_v4 }
 0x23c   :  { %v1971_v6 = vpop.f32.mrb[4].mxu1 }
 0x23d   :  { %v2559_v7 = vadd.f32 %v1971_v6, %v1795_v62  ;;  %v356_v8 = vpop.f32.mrb[5].mxu1 }
 0x23e   :  { %v2561_v9 = vadd.f32 %v1795_v62, %v356_v8 }
 0x240   :  { %v1974_v10 = vpop.f32.mrb[6].mxu1 }
 0x241   :  { %v2563_v11 = vadd.f32 %v1974_v10, %v1795_v62  ;;  %v366_v12 = vpop.f32.mrb[7].mxu1 }
 0x242   :  { %v2565_v13 = vadd.f32 %v1795_v62, %v366_v12 }
 0x244   :  { %v448_v15 = vpop.f32.mrb[8].mxu1 }
 0x245   :  { %v452_v16 = vadd.f32 %v448_v15, %v337_v14  ;;  %v1985_v17 = vpop.f32.mrb[9].mxu1 }
 0x247   :  { %2246 = vtanh.f32 %v452_v16  ;;  %v1804_v19 = vmul.f32 -1.442695, %v452_v16 }
 0x249   :  { %2248 = vpow2.f32 %v1804_v19 }
 0x251   :  { %v2247_v18 = vpop.eup %2246 }
 0x252   :  { %462 = vrot.lane.b32.xlu0 %v2247_v18, %s2370_s4 }
 0x253   :  { %v2249_v20 = vpop.eup %2248 }
 0x254   :  { %v456_v21 = vadd.f32 1.0, %v2249_v20 }
 0x256   :  { %2250 = vrcp.f32 %v456_v21 }
 0x260   :  { %v2251_v22 = vpop.eup %2250 }
 0x261   :  { %v460_v25 = vmul.f32 0.0, %v2251_v22 }
 0x2c4   :  { %v463_v23 = vpop.permute.xlu0 %462 }
 0x2c5   :  { %v465_v24 = vmul.f32 %v2251_v22, %v463_v23 }
 0x2c7   :  { %467 = vrot.lane.b32.xlu1 %v465_v24, %s2371_s19 }
 0x339   :  { %v468_v26 = vpop.permute.xlu1 %467 }
 0x33a   :  { %v470_v27 = vadd.f32 %v468_v26, %v460_v25 }
 0x33c   :  { %2252 = vtanh.f32 %v470_v27 }
 0x346   :  { %v2253_v28 = vpop.eup %2252 }
 0x347   :  { %473 = vrot.lane.b32.xlu0 %v2253_v28, %s2370_s4 }
 0x3b9   :  { %v474_v29 = vpop.permute.xlu0 %473 }
 0x3ba   :  { %v476_v30 = vmul.f32 %v2251_v22, %v474_v29 }
 0x3bc   :  { %478 = vrot.lane.b32.xlu1 %v476_v30, %s2371_s19 }
 0x42e   :  { %v479_v31 = vpop.permute.xlu1 %478 }
 0x42f   :  { %1995 = vmatmul.mubr.msk.f32.vlgmr.msra.gmra.mrb[8].mxu0 %vm245_vm10, %v479_v31 }
 0x430   :  { %2173 = vmatpush3.bf16.msra.mxu0 %v2515_v50  ;;  %2016 = vmatprep.mubr.msk.f32.mxu0 %vm2369_vm9, %v2367_v32 }
 0x431   :  { %2174 = vmatprep.subr.bf16.mxu0 %v2368_v47 }
 0x434   :  { %2176 = vmatpush3.bf16.msra.mxu0 %v2525_v53 }
 0x435   :  { %2183 = vmatprep.subr.bf16.mxu0 %v2368_v47 }
 0x502   :  { %v548_v33 = vpop.f32.mrb[8].mxu0 }
 0x503   :  { %v552_v34 = vadd.f32 %v548_v33, %v342_v0  ;;  %v1996_v35 = vpop.f32.mrb[9].mxu0 }
 0x505   :  { %2254 = vtanh.f32 %v552_v34  ;;  %v1806_v37 = vmul.f32 -1.442695, %v552_v34 }
 0x507   :  { %2256 = vpow2.f32 %v1806_v37 }
 0x50f   :  { %v2255_v36 = vpop.eup %2254 }
 0x510   :  { %562 = vrot.lane.b32.xlu0 %v2255_v36, %s2370_s4 }
 0x511   :  { %v2257_v38 = vpop.eup %2256 }
 0x512   :  { %v556_v39 = vadd.f32 1.0, %v2257_v38 }
 0x514   :  { %2258 = vrcp.f32 %v556_v39 }
 0x51e   :  { %v2259_v40 = vpop.eup %2258 }
 0x51f   :  { %v560_v43 = vmul.f32 %v2259_v40, %v470_v27 }
 0x582   :  { %v563_v41 = vpop.permute.xlu0 %562 }
 0x583   :  { %v565_v42 = vmul.f32 %v2259_v40, %v563_v41 }
 0x585   :  { %567 = vrot.lane.b32.xlu1 %v565_v42, %s2371_s19 }
 0x5f7   :  { %v568_v44 = vpop.permute.xlu1 %567 }
 0x5f8   :  { %v570_v45 = vadd.f32 %v568_v44, %v560_v43 }
 0x5fa   :  { %2260 = vtanh.f32 %v570_v45 }
 0x604   :  { %v2261_v46 = vpop.eup %2260 }
 0x605   :  { %573 = vrot.lane.b32.xlu0 %v2261_v46, %s2370_s4 }
 0x677   :  { %v574_v48 = vpop.permute.xlu0 %573 }
 0x678   :  { %v576_v49 = vmul.f32 %v2259_v40, %v574_v48 }
 0x67a   :  { %578 = vrot.lane.b32.xlu1 %v576_v49, %s2371_s19 }
 0x6ec   :  { %v579_v51 = vpop.permute.xlu1 %578 }
 0x6ed   :  { %2006 = vmatmul.mubr.msk.f32.vlgmr.msra.gmra.mrb[10].mxu1 %vm245_vm10, %v579_v51 }
 0x6ee   :  { %2179 = vmatpush3.bf16.msra.mxu1 %v2515_v50  ;;  %2027 = vmatprep.mubr.msk.f32.mxu1 %vm2369_vm9, %v2367_v32 }
 0x6ef   :  { %2180 = vmatprep.subr.bf16.mxu1 %v2368_v47 }
 0x6f2   :  { %2182 = vmatpush3.bf16.msra.mxu1 %v2525_v53 }
 0x6f3   :  { %2189 = vmatprep.subr.bf16.mxu1 %v2368_v47 }
 0x7c0   :  { %v648_v52 = vpop.f32.mrb[10].mxu1 }
 0x7c1   :  { %v652_v54 = vadd.f32 %v648_v52, %v2557_v5  ;;  %v2007_v55 = vpop.f32.mrb[11].mxu1 }
 0x7c3   :  { %2262 = vtanh.f32 %v652_v54  ;;  %v1808_v57 = vmul.f32 -1.442695, %v652_v54 }
 0x7c5   :  { %2264 = vpow2.f32 %v1808_v57 }
 0x7cd   :  { %v2263_v56 = vpop.eup %2262 }
 0x7ce   :  { %662 = vrot.lane.b32.xlu0 %v2263_v56, %s2370_s4 }
 0x7cf   :  { %v2265_v58 = vpop.eup %2264 }
 0x7d0   :  { %v656_v59 = vadd.f32 1.0, %v2265_v58 }
 0x7d2   :  { %2266 = vrcp.f32 %v656_v59 }
 0x7dc   :  { %v2267_v60 = vpop.eup %2266 }
 0x7dd   :  { %v660_v63 = vmul.f32 %v2267_v60, %v570_v45 }
 0x840   :  { %v663_v61 = vpop.permute.xlu0 %662 }
 0x841   :  { %v665_v62 = vmul.f32 %v2267_v60, %v663_v61 }
 0x843   :  { %667 = vrot.lane.b32.xlu1 %v665_v62, %s2371_s19 }
 0x8b5   :  { %v668_v0 = vpop.permute.xlu1 %667 }
 0x8b6   :  { %v670_v1 = vadd.f32 %v668_v0, %v660_v63 }
 0x8b8   :  { %2268 = vtanh.f32 %v670_v1 }
 0x8c2   :  { %v2269_v2 = vpop.eup %2268 }
 0x8c3   :  { %673 = vrot.lane.b32.xlu0 %v2269_v2, %s2370_s4 }
 0x935   :  { %v674_v4 = vpop.permute.xlu0 %673 }
 0x936   :  { %v676_v5 = vmul.f32 %v2267_v60, %v674_v4 }
 0x938   :  { %678 = vrot.lane.b32.xlu1 %v676_v5, %s2371_s19 }
 0x9aa   :  { %v679_v6 = vpop.permute.xlu1 %678 }
 0x9ab   :  { %2017 = vmatmul.mubr.msk.f32.vlgmr.msra.gmra.mrb[10].mxu0 %vm245_vm10, %v679_v6 }
 0x9ac   :  { %2185 = vmatpush3.bf16.msra.mxu0 %v2515_v50  ;;  %2038 = vmatprep.mubr.msk.f32.mxu0 %vm2369_vm9, %v2367_v32 }
 0x9ad   :  { %2186 = vmatprep.subr.bf16.mxu0 %v2368_v47 }
 0x9b0   :  { %2188 = vmatpush3.bf16.msra.mxu0 %v2525_v53 }
 0x9b1   :  { %2195 = vmatprep.subr.bf16.mxu0 %v2368_v47 }
 0xa7e   :  { %v748_v8 = vpop.f32.mrb[10].mxu0 }
 0xa7f   :  { %v752_v10 = vadd.f32 %v748_v8, %v2555_v3  ;;  %v2018_v12 = vpop.f32.mrb[11].mxu0 }
 0xa81   :  { %2270 = vtanh.f32 %v752_v10  ;;  %v1810_v15 = vmul.f32 -1.442695, %v752_v10 }
 0xa83   :  { %2272 = vpow2.f32 %v1810_v15 }
 0xa8b   :  { %v2271_v14 = vpop.eup %2270 }
 0xa8c   :  { %762 = vrot.lane.b32.xlu0 %v2271_v14, %s2370_s4 }
 0xa8d   :  { %v2273_v16 = vpop.eup %2272 }
 0xa8e   :  { %v756_v17 = vadd.f32 1.0, %v2273_v16 }
 0xa90   :  { %2274 = vrcp.f32 %v756_v17 }
 0xa9a   :  { %v2275_v18 = vpop.eup %2274 }
 0xa9b   :  { %v760_v21 = vmul.f32 %v2275_v18, %v670_v1 }
 0xafe   :  { %v763_v19 = vpop.permute.xlu0 %762 }
 0xaff   :  { %v765_v20 = vmul.f32 %v2275_v18, %v763_v19 }
 0xb01   :  { %767 = vrot.lane.b32.xlu1 %v765_v20, %s2371_s19 }
 0xb73   :  { %v768_v22 = vpop.permute.xlu1 %767 }
 0xb74   :  { %v770_v23 = vadd.f32 %v768_v22, %v760_v21 }
 0xb76   :  { %2276 = vtanh.f32 %v770_v23 }
 0xb80   :  { %v2277_v3 = vpop.eup %2276 }
 0xb81   :  { %773 = vrot.lane.b32.xlu0 %v2277_v3, %s2370_s4 }
 0xbf3   :  { %v774_v24 = vpop.permute.xlu0 %773 }
 0xbf4   :  { %v776_v25 = vmul.f32 %v2275_v18, %v774_v24 }
 0xbf6   :  { %778 = vrot.lane.b32.xlu1 %v776_v25, %s2371_s19 }
 0xc68   :  { %v779_v26 = vpop.permute.xlu1 %778 }
 0xc69   :  { %2028 = vmatmul.mubr.msk.f32.vlgmr.msra.gmra.mrb[12].mxu1 %vm245_vm10, %v779_v26 }
 0xc6a   :  { %2191 = vmatpush3.bf16.msra.mxu1 %v2515_v50  ;;  %2049 = vmatprep.mubr.msk.f32.mxu1 %vm2369_vm9, %v2367_v32 }
 0xc6b   :  { %2192 = vmatprep.subr.bf16.mxu1 %v2368_v47 }
 0xc6e   :  { %2194 = vmatpush3.bf16.msra.mxu1 %v2525_v53 }
 0xc6f   :  { %2201 = vmatprep.subr.bf16.mxu1 %v2368_v47 }
 0xd3c   :  { %v848_v27 = vpop.f32.mrb[12].mxu1 }
 0xd3d   :  { %v852_v28 = vadd.f32 %v848_v27, %v2561_v9  ;;  %v2029_v29 = vpop.f32.mrb[13].mxu1 }
 0xd3f   :  { %2278 = vtanh.f32 %v852_v28  ;;  %v1812_v31 = vmul.f32 -1.442695, %v852_v28 }
 0xd41   :  { %2280 = vpow2.f32 %v1812_v31  ;;  %v1263_v31 = vld [vmem:[%s2749_s6] sm:$0xff] }
 0xd49   :  { %v2279_v30 = vpop.eup %2278 }
 0xd4a   :  { %862 = vrot.lane.b32.xlu0 %v2279_v30, %s2370_s4  ;;  %v1178_v30 = vld [vmem:[%s2748_s5 + $0x8] sm:$0xff] }
 0xd4b   :  { %v2281_v33 = vpop.eup %2280 }
 0xd4c   :  { %v856_v34 = vadd.f32 1.0, %v2281_v33 }
 0xd4e   :  { %2282 = vrcp.f32 %v856_v34  ;;  %v1264_v34 = vld [vmem:[%s2749_s6 + $0x8] sm:$0xff] }
 0xd58   :  { %v2283_v35 = vpop.eup %2282 }
 0xd59   :  { %v860_v38 = vmul.f32 %v2283_v35, %v770_v23 }
 0xdbc   :  { %v863_v36 = vpop.permute.xlu0 %862 }
 0xdbd   :  { %v865_v37 = vmul.f32 %v2283_v35, %v863_v36  ;;  %v1180_v36 = vld [vmem:[%s2748_s5 + $0x18] sm:$0xff] }
 0xdbf   :  { %867 = vrot.lane.b32.xlu1 %v865_v37, %s2371_s19  ;;  %v2208_v37 = vpack.c.bf16 %v1264_v34, %v1263_v31 }
 0xe31   :  { %v868_v39 = vpop.permute.xlu1 %867 }
 0xe32   :  { %v870_v40 = vadd.f32 %v868_v39, %v860_v38  ;;  %v1265_v38 = vld [vmem:[%s2749_s6 + $0x10] sm:$0xff]  ;;  %v1266_v39 = vld [vmem:[%s2749_s6 + $0x18] sm:$0xff] }
 0xe34   :  { %2284 = vtanh.f32 %v870_v40 }
 0xe3e   :  { %v2285_v9 = vpop.eup %2284 }
 0xe3f   :  { %873 = vrot.lane.b32.xlu0 %v2285_v9, %s2370_s4  ;;  %v2211_v9 = vpack.c.bf16 %v1266_v39, %v1265_v38 }
 0xeb1   :  { %v874_v41 = vpop.permute.xlu0 %873 }
 0xeb2   :  { %v876_v42 = vmul.f32 %v2283_v35, %v874_v41  ;;  %v1179_v35 = vld [vmem:[%s2748_s5 + $0x10] sm:$0xff] }
 0xeb4   :  { %878 = vrot.lane.b32.xlu1 %v876_v42, %s2371_s19 }
 0xf26   :  { %v879_v43 = vpop.permute.xlu1 %878 }
 0xf27   :  { %2039 = vmatmul.mubr.msk.f32.vlgmr.msra.gmra.mrb[12].mxu0 %vm245_vm10, %v879_v43 }
 0xf28   :  { %2197 = vmatpush3.bf16.msra.mxu0 %v2515_v50  ;;  %2060 = vmatprep.mubr.msk.f32.mxu0 %vm2369_vm9, %v2367_v32 }
 0xf29   :  { %2198 = vmatprep.subr.bf16.mxu0 %v2368_v47 }
 0xf2c   :  { %2200 = vmatpush3.bf16.msra.mxu0 %v2525_v53 }
 0xf2d   :  { %2207 = vmatprep.subr.bf16.mxu0 %v2368_v47 }
 0xffa   :  { %v948_v44 = vpop.f32.mrb[12].mxu0 }
 0xffb   :  { %v952_v45 = vadd.f32 %v948_v44, %v2559_v7  ;;  %v2040_v46 = vpop.f32.mrb[13].mxu0 }
 0xffd   :  { %2286 = vtanh.f32 %v952_v45  ;;  %v1814_v49 = vmul.f32 -1.442695, %v952_v45 }
 0xfff   :  { %2288 = vpow2.f32 %v1814_v49 }
0x1007   :  { %v2287_v48 = vpop.eup %2286 }
0x1008   :  { %962 = vrot.lane.b32.xlu0 %v2287_v48, %s2370_s4  ;;  %v1819_v48 = vld [vmem:[%s2750_s7] ss:$0 sm:$0xff] }
0x1009   :  { %v2289_v50 = vpop.eup %2288 }
0x100a   :  { %v956_v51 = vadd.f32 1.0, %v2289_v50 }
0x100c   :  { %2290 = vrcp.f32 %v956_v51 }
0x1016   :  { %v2291_v52 = vpop.eup %2290 }
0x1017   :  { %v960_v53 = vmul.f32 %v2291_v52, %v870_v40  ;;  %v2205_v40 = vpack.c.bf16 %v1180_v36, %v1179_v35 }
0x107a   :  { %v963_v54 = vpop.permute.xlu0 %962 }
0x107b   :  { %v965_v55 = vmul.f32 %v2291_v52, %v963_v54 }
0x107d   :  { %967 = vrot.lane.b32.xlu1 %v965_v55, %s2371_s19 }
0x10ef   :  { %v968_v56 = vpop.permute.xlu1 %967 }
0x10f0   :  { %v970_v57 = vadd.f32 %v968_v56, %v960_v53 }
0x10f2   :  { %2292 = vtanh.f32 %v970_v57 }
0x10fc   :  { %v2293_v7 = vpop.eup %2292 }
0x10fd   :  { %973 = vrot.lane.b32.xlu0 %v2293_v7, %s2370_s4 }
0x116f   :  { %v974_v58 = vpop.permute.xlu0 %973 }
0x1170   :  { %v976_v59 = vmul.f32 %v2291_v52, %v974_v58 }
0x1172   :  { %978 = vrot.lane.b32.xlu1 %v976_v59, %s2371_s19 }
0x11e4   :  { %v979_v60 = vpop.permute.xlu1 %978 }
0x11e5   :  { %2050 = vmatmul.mubr.msk.f32.vlgmr.msra.gmra.mrb[14].mxu1 %vm245_vm10, %v979_v60 }
0x11e6   :  { %2071 = vmatprep.mubr.msk.f32.mxu1 %vm2369_vm9, %v2367_v32 }
0x12b8   :  { %v1048_v61 = vpop.f32.mrb[14].mxu1 }
0x12b9   :  { %v1052_v62 = vadd.f32 %v1048_v61, %v2565_v13  ;;  %v2051_v63 = vpop.f32.mrb[15].mxu1 }
0x12bb   :  { %2294 = vtanh.f32 %v1052_v62  ;;  %v1816_v1 = vmul.f32 -1.442695, %v1052_v62 }
0x12bd   :  { %2296 = vpow2.f32 %v1816_v1 }
0x12c5   :  { %v2295_v0 = vpop.eup %2294 }
0x12c6   :  { %1062 = vrot.lane.b32.xlu0 %v2295_v0, %s2370_s4 }
0x12c7   :  { %v2297_v2 = vpop.eup %2296 }
0x12c8   :  { %v1056_v4 = vadd.f32 1.0, %v2297_v2 }
0x12ca   :  { %2298 = vrcp.f32 %v1056_v4 }
0x12d4   :  { %v2299_v5 = vpop.eup %2298 }
0x12d5   :  { %v1060_v10 = vmul.f32 %v2299_v5, %v970_v57 }
0x1338   :  { %v1063_v6 = vpop.permute.xlu0 %1062 }
0x1339   :  { %v1065_v8 = vmul.f32 %v2299_v5, %v1063_v6 }
0x133b   :  { %1067 = vrot.lane.b32.xlu1 %v1065_v8, %s2371_s19 }
0x13ad   :  { %v1068_v12 = vpop.permute.xlu1 %1067 }
0x13ae   :  { %v1070_v14 = vadd.f32 %v1068_v12, %v1060_v10 }
0x13b0   :  { %2300 = vtanh.f32 %v1070_v14 }
0x13ba   :  { %v2301_v13 = vpop.eup %2300 }
0x13bb   :  { %1073 = vrot.lane.b32.xlu0 %v2301_v13, %s2370_s4 }
0x142d   :  { %v1074_v15 = vpop.permute.xlu0 %1073 }
0x142e   :  { %v1076_v16 = vmul.f32 %v2299_v5, %v1074_v15 }
0x1430   :  { %1078 = vrot.lane.b32.xlu1 %v1076_v16, %s2371_s19 }
0x14a2   :  { %v1079_v17 = vpop.permute.xlu1 %1078 }
0x14a3   :  { %2061 = vmatmul.mubr.msk.f32.vlgmr.msra.gmra.mrb[14].mxu0 %vm245_vm10, %v1079_v17 }
0x14a4   :  { %2082 = vmatprep.mubr.msk.f32.mxu0 %vm2369_vm9, %v2367_v32  ;;  %2209 = vmatpush3.bf16.msra.mxu0 %v2208_v37 }
0x14a5   :  { %2210 = vmatprep.subr.bf16.mxu0 %v2368_v47 }
0x14a8   :  { %2212 = vmatpush3.bf16.msra.mxu0 %v2211_v9 }
0x14a9   :  { %2219 = vmatprep.subr.bf16.mxu0 %v2368_v47 }
0x14ab   :  { %2083 = vmatmul.mubr.f32.vlgmr.msra.gmra.mrb[16].mxu0 %v2367_v32 }
0x14ac   :  { %2221 = vmatpush3.bf16.msra.mxu0 %v2208_v37  ;;  %2104 = vmatprep.mubr.msk.f32.mxu0 %vm2369_vm9, %v2367_v32 }
0x14ad   :  { %2222 = vmatprep.subr.bf16.mxu0 %v2368_v47 }
0x14b0   :  { %2224 = vmatpush3.bf16.msra.mxu0 %v2211_v9 }
0x14b1   :  { %2231 = vmatprep.subr.bf16.mxu0 %v2368_v47 }
0x1576   :  { %v1148_v18 = vpop.f32.mrb[14].mxu0 }
0x1577   :  { %v1152_v19 = vadd.f32 %v1148_v18, %v2563_v11  ;;  %v2062_v20 = vpop.f32.mrb[15].mxu0  ;;  %v1177_v11 = vld [vmem:[%s2748_s5] sm:$0xff] }
0x1578   :  { %v2202_v33 = vpack.c.bf16 %v1178_v30, %v1177_v11 }
0x1579   :  { %2302 = vtanh.f32 %v1152_v19  ;;  %v1818_v22 = vmul.f32 -1.442695, %v1152_v19 }
0x157a   :  { %2203 = vmatpush3.bf16.msra.mxu1 %v2202_v33 }
0x157b   :  { %2304 = vpow2.f32 %v1818_v22  ;;  %2204 = vmatprep.subr.bf16.mxu1 %v2368_v47 }
0x157e   :  { %2206 = vmatpush3.bf16.msra.mxu1 %v2205_v40  ;;  %v1333_v45 = vpop.f32.mrb[16].mxu0 }
0x157f   :  { %2213 = vmatprep.subr.bf16.mxu1 %v2368_v47  ;;  %v2084_v46 = vpop.f32.mrb[17].mxu0 }
0x1583   :  { %v2303_v21 = vpop.eup %2302 }
0x1584   :  { %1162 = vrot.lane.b32.xlu0 %v2303_v21, %s2370_s4 }
0x1585   :  { %v2305_v23 = vpop.eup %2304 }
0x1586   :  { %v1156_v3 = vadd.f32 1.0, %v2305_v23 }
0x1588   :  { %2306 = vrcp.f32 %v1156_v3 }
0x1592   :  { %v2307_v24 = vpop.eup %2306 }
0x1593   :  { %v1160_v27 = vmul.f32 %v2307_v24, %v1070_v14 }
0x15f6   :  { %v1163_v25 = vpop.permute.xlu0 %1162 }
0x15f7   :  { %v1165_v26 = vmul.f32 %v2307_v24, %v1163_v25 }
0x15f9   :  { %1167 = vrot.lane.b32.xlu1 %v1165_v26, %s2371_s19 }
0x166b   :  { %v1168_v28 = vpop.permute.xlu1 %1167 }
0x166c   :  { %v1170_v29 = vadd.f32 %v1168_v28, %v1160_v27 }
0x166e   :  { %2308 = vtanh.f32 %v1170_v29 }
0x1678   :  { %v2309_v41 = vpop.eup %2308 }
0x1679   :  { %1173 = vrot.lane.b32.xlu0 %v2309_v41, %s2370_s4 }
0x16eb   :  { %v1174_v42 = vpop.permute.xlu0 %1173 }
0x16ec   :  { %v1176_v43 = vmul.f32 %v2307_v24, %v1174_v42 }
0x16ee   :  { %1189 = vrot.lane.b32.xlu1 %v1176_v43, %s2371_s19 }
0x1760   :  { %v1190_v44 = vpop.permute.xlu1 %1189 }
0x1761   :  { %2072 = vmatmul.mubr.msk.f32.vlgmr.msra.gmra.mrb[16].mxu1 %vm245_vm10, %v1190_v44 }
0x1762   :  { %2215 = vmatpush3.bf16.msra.mxu1 %v2208_v37  ;;  %2093 = vmatprep.mubr.msk.f32.mxu1 %vm2369_vm9, %v2367_v32 }
0x1763   :  { %2216 = vmatprep.subr.bf16.mxu1 %v2368_v47 }
0x1766   :  { %2218 = vmatpush3.bf16.msra.mxu1 %v2211_v9 }
0x1767   :  { %2225 = vmatprep.subr.bf16.mxu1 %v2368_v47 }
0x1834   :  { %v1259_v49 = vpop.f32.mrb[16].mxu1 }
0x1835   :  { %v2687_v50 = vadd.f32 %v1819_v48, %v1259_v49  ;;  %v2073_v51 = vpop.f32.mrb[17].mxu1 }
0x1837   :  { %v1337_v52 = vadd.f32 %v1333_v45, %v2687_v50 }
0x1839   :  { %2310 = vtanh.f32 %v1337_v52  ;;  %v1821_v55 = vmul.f32 -1.442695, %v1337_v52 }
0x183b   :  { %2312 = vpow2.f32 %v1821_v55 }
0x1843   :  { %v2311_v54 = vpop.eup %2310 }
0x1844   :  { %1347 = vrot.lane.b32.xlu0 %v2311_v54, %s2370_s4 }
0x1845   :  { %v2313_v53 = vpop.eup %2312 }
0x1846   :  { %v1341_v56 = vadd.f32 1.0, %v2313_v53 }
0x1848   :  { %2314 = vrcp.f32 %v1341_v56 }
0x1852   :  { %v2315_v57 = vpop.eup %2314 }
0x1853   :  { %v1345_v59 = vmul.f32 0.0, %v2315_v57 }
0x18b6   :  { %v1348_v7 = vpop.permute.xlu0 %1347 }
0x18b7   :  { %v1350_v58 = vmul.f32 %v2315_v57, %v1348_v7 }
0x18b9   :  { %1352 = vrot.lane.b32.xlu1 %v1350_v58, %s2371_s19 }
0x192b   :  { %v1353_v60 = vpop.permute.xlu1 %1352 }
0x192c   :  { %v1355_v61 = vadd.f32 %v1353_v60, %v1345_v59  ;;  %v1683_v59 = vld [vmem:[%s2751_s8 + $0x8] sm:$0xff]  ;;  %v1684_v60 = vld [vmem:[%s2751_s8 + $0x10] sm:$0xff] }
0x192e   :  { %2316 = vtanh.f32 %v1355_v61  ;;  %v1449_v17 = vrot.slane %v1355_v61, 7 }
0x1938   :  { %v2317_v62 = vpop.eup %2316 }
0x1939   :  { %1358 = vrot.lane.b32.xlu0 %v2317_v62, %s2370_s4  ;;  %v1685_v62 = vld [vmem:[%s2751_s8 + $0x18] sm:$0xff] }
0x19ab   :  { %v1359_v63 = vpop.permute.xlu0 %1358 }
0x19ac   :  { %v1361_v0 = vmul.f32 %v2315_v57, %v1359_v63  ;;  %v2235_v63 = vpack.c.bf16 %v1685_v62, %v1684_v60 }
0x19ae   :  { %1363 = vrot.lane.b32.xlu1 %v1361_v0, %s2371_s19 }
0x1a20   :  { %v1364_v1 = vpop.permute.xlu1 %1363 }
0x1a21   :  { %2094 = vmatmul.mubr.msk.f32.vlgmr.msra.gmra.mrb[18].mxu1 %vm245_vm10, %v1364_v1 }
0x1a22   :  { %2227 = vmatpush3.bf16.msra.mxu1 %v2208_v37  ;;  %2115 = vmatprep.mubr.msk.f32.mxu1 %vm2369_vm9, %v2367_v32 }
0x1a23   :  { %2228 = vmatprep.subr.bf16.mxu1 %v2368_v47 }
0x1a26   :  { %2230 = vmatpush3.bf16.msra.mxu1 %v2211_v9 }
0x1af4   :  { %v1433_v2 = vpop.f32.mrb[18].mxu1 }
0x1af5   :  { %v1438_v4 = vrot.slane %v1433_v2, 7  ;;  %v2095_v5 = vpop.f32.mrb[19].mxu1 }
0x1af7   :  { %v1440_v6 = vadd.f32 %v1438_v4, %v2687_v50 }
0x1af9   :  { %2318 = vtanh.f32 %v1440_v6  ;;  %v1823_v10 = vmul.f32 -1.442695, %v1440_v6  ;;  %v1686_v6 = vld [vmem:[#allocation2] sm:$0x1] }
0x1afb   :  { %2320 = vpow2.f32 %v1823_v10 }
0x1b03   :  { %v2319_v8 = vpop.eup %2318 }
0x1b04   :  { %1453 = vrot.lane.b32.xlu0 %v2319_v8, %s2370_s4 }
0x1b05   :  { %v2321_v12 = vpop.eup %2320 }
0x1b06   :  { %v1444_v14 = vadd.f32 1.0, %v2321_v12 }
0x1b08   :  { %2322 = vrcp.f32 %v1444_v14 }
0x1b12   :  { %v2323_v13 = vpop.eup %2322 }
0x1b13   :  { %v1451_v18 = vmul.f32 %v2323_v13, %v1449_v17 }
0x1b76   :  { %v1454_v15 = vpop.permute.xlu0 %1453 }
0x1b77   :  { %v1456_v16 = vmul.f32 %v2323_v13, %v1454_v15 }
0x1b79   :  { %1458 = vrot.lane.b32.xlu1 %v1456_v16, %s2371_s19 }
0x1beb   :  { %v1459_v19 = vpop.permute.xlu1 %1458 }
0x1bec   :  { %v1461_v20 = vadd.f32 %v1459_v19, %v1451_v18 }
0x1bee   :  { %2324 = vtanh.f32 %v1461_v20 }
0x1bf8   :  { %v2325_v21 = vpop.eup %2324 }
0x1bf9   :  { %1464 = vrot.lane.b32.xlu0 %v2325_v21, %s2370_s4 }
0x1c6b   :  { %v1465_v22 = vpop.permute.xlu0 %1464 }
0x1c6c   :  { %v1467_v23 = vmul.f32 %v2323_v13, %v1465_v22 }
0x1c6e   :  { %v1469_v3 = vrot.slane %v1467_v23, 1 }
0x1c70   :  { %1470 = vrot.lane.b32.xlu1 %v1469_v3, %s2371_s19 }
0x1ce2   :  { %v1471_v24 = vpop.permute.xlu1 %1470 }
0x1ce3   :  { %2105 = vmatmul.mubr.msk.f32.vlgmr.msra.gmra.mrb[18].mxu0 %vm245_vm10, %v1471_v24 }
0x1ce4   :  { %2126 = vmatprep.mubr.msk.f32.mxu0 %vm2369_vm9, %v2367_v32  ;;  %v1556_v32 = vrot.slane %v1461_v20, 7 }
0x1db6   :  { %v1540_v25 = vpop.f32.mrb[18].mxu0 }
0x1db7   :  { %v1545_v26 = vrot.slane %v1540_v25, 6  ;;  %v2106_v27 = vpop.f32.mrb[19].mxu0 }
0x1db9   :  { %v1547_v28 = vadd.f32 %v1545_v26, %v2687_v50 }
0x1dbb   :  { %2326 = vtanh.f32 %v1547_v28  ;;  %v1825_v11 = vmul.f32 -1.442695, %v1547_v28 }
0x1dbd   :  { %2328 = vpow2.f32 %v1825_v11 }
0x1dc5   :  { %v2327_v29 = vpop.eup %2326 }
0x1dc6   :  { %1560 = vrot.lane.b32.xlu0 %v2327_v29, %s2370_s4 }
0x1dc7   :  { %v2329_v30 = vpop.eup %2328 }
0x1dc8   :  { %v1551_v31 = vadd.f32 1.0, %v2329_v30 }
0x1dca   :  { %2330 = vrcp.f32 %v1551_v31 }
0x1dd4   :  { %v2331_v33 = vpop.eup %2330 }
0x1dd5   :  { %v1558_v36 = vmul.f32 %v2331_v33, %v1556_v32 }
0x1e38   :  { %v1561_v34 = vpop.permute.xlu0 %1560 }
0x1e39   :  { %v1563_v35 = vmul.f32 %v2331_v33, %v1561_v34 }
0x1e3b   :  { %1565 = vrot.lane.b32.xlu1 %v1563_v35, %s2371_s19 }
0x1ead   :  { %v1566_v37 = vpop.permute.xlu1 %1565 }
0x1eae   :  { %v1568_v38 = vadd.f32 %v1566_v37, %v1558_v36 }
0x1eb0   :  { %2332 = vtanh.f32 %v1568_v38  ;;  %v1663_v56 = vrot.slane %v1568_v38, 7 }
0x1eba   :  { %v2333_v39 = vpop.eup %2332 }
0x1ebb   :  { %1571 = vrot.lane.b32.xlu0 %v2333_v39, %s2370_s4 }
0x1f2d   :  { %v1572_v40 = vpop.permute.xlu0 %1571 }
0x1f2e   :  { %v1574_v9 = vmul.f32 %v2331_v33, %v1572_v40 }
0x1f30   :  { %v1576_v41 = vrot.slane %v1574_v9, 2 }
0x1f32   :  { %1577 = vrot.lane.b32.xlu1 %v1576_v41, %s2371_s19 }
0x1fa4   :  { %v1578_v42 = vpop.permute.xlu1 %1577 }
0x1fa5   :  { %2116 = vmatmul.mubr.msk.f32.vlgmr.msra.gmra.mrb[20].mxu1 %vm245_vm10, %v1578_v42 }
0x2078   :  { %v1647_v43 = vpop.f32.mrb[20].mxu1 }
0x2079   :  { %v1652_v44 = vrot.slane %v1647_v43, 5  ;;  %v2117_v45 = vpop.f32.mrb[21].mxu1 }
0x207b   :  { %v1654_v46 = vadd.f32 %v1652_v44, %v2687_v50  ;;  %v1682_v50 = vld [vmem:[%s2751_s8] sm:$0xff]  ;;  %s2342_s8 = scalar_lea.vmem %s1772_s20, 16 }
0x207c   :  { %v2232_v61 = vpack.c.bf16 %v1683_v59, %v1682_v50  ;;  %p2343_p0 = scmp.ne.s32.totalorder %s1772_s20, %s2342_s8 }
0x207d   :  { %2334 = vtanh.f32 %v1654_v46  ;;  %v1827_v49 = vmul.f32 -1.442695, %v1654_v46 }
0x207e   :  { %2233 = vmatpush3.bf16.msra.mxu0 %v2232_v61 }
0x207f   :  { %2336 = vpow2.f32 %v1827_v49  ;;  %2234 = vmatprep.subr.bf16.mxu0 %v2368_v47 }
0x2082   :  { %2236 = vmatpush3.bf16.msra.mxu0 %v2235_v63 }
0x2087   :  { %v2335_v48 = vpop.eup %2334 }
0x2088   :  { %1667 = vrot.lane.b32.xlu0 %v2335_v48, %s2370_s4 }
0x2089   :  { %v2337_v51 = vpop.eup %2336 }
0x208a   :  { %v1658_v52 = vadd.f32 1.0, %v2337_v51 }
0x208c   :  { %2338 = vrcp.f32 %v1658_v52 }
0x2096   :  { %v2339_v54 = vpop.eup %2338 }
0x2097   :  { %v1665_v57 = vmul.f32 %v2339_v54, %v1663_v56 }
0x20fa   :  { %v1668_v55 = vpop.permute.xlu0 %1667 }
0x20fb   :  { %v1670_v53 = vmul.f32 %v2339_v54, %v1668_v55 }
0x20fd   :  { %1672 = vrot.lane.b32.xlu1 %v1670_v53, %s2371_s19 }
0x216f   :  { %v1673_v7 = vpop.permute.xlu1 %1672 }
0x2170   :  { %v1675_v58 = vadd.f32 %v1673_v7, %v1665_v57 }
0x2172   :  { %2340 = vtanh.f32 %v1675_v58 }
0x217c   :  { %v2341_v0 = vpop.eup %2340 }
0x217d   :  { %1678 = vrot.lane.b32.xlu0 %v2341_v0, %s2370_s4  ;;  %s2346_s4 = scalar_lea.vmem %s1772_s20, 32 }
0x217e   :  { %p2348_p2 = scmp.lt.s32.totalorder %s2346_s4, %s2342_s8 }
0x2180   :  { %p2349_p3 = por %p2348_p2, %p2347_p1 }
0x2182   :  { %p2350_p4 = pnand %p2349_p3, %p2343_p0 }
0x21ef   :  { %v1679_v1 = vpop.permute.xlu0 %1678 }
0x21f0   :  { %v1681_v2 = vmul.f32 %v2339_v54, %v1679_v1 }
0x21f2   :  { %v1688_v4 = vrot.slane %v1681_v2, 3 }
0x21f4   :  { %1689 = vrot.lane.b32.xlu1 %v1688_v4, %s2371_s19 }
0x2266   :  { %v1690_v5 = vpop.permute.xlu1 %1689 }
0x2267   :  { %2127 = vmatmul.mubr.msk.f32.vlgmr.msra.gmra.mrb[20].mxu0 %vm245_vm10, %v1690_v5 }
0x233a   :  { %v1759_v8 = vpop.f32.mrb[20].mxu0 }
0x233b   :  { %v1760_v10 = vadd.f32 %v1759_v8, %v1686_v6  ;;  %v2128_v12 = vpop.f32.mrb[21].mxu0 }
0x233d   :  { %1764 = vst.msk [vmem:[#allocation3] sm:$0x1] %vm1763_vm11, %v1760_v10 }
0x233e   :  { %2353 = shalt.err (!%p2350_p4)
}
0x233f   :  { %s2354_s9 = scalar_lea.hbm %s2753_s10, 16 }
0x2340   :  { %p2355_p5 = scmp.ne.s32.totalorder %s2753_s10, %s2354_s9  ;;  %p2358_p6 = scmp.lt.u32.totalorder %s2354_s9, %s2753_s10 }
0x2342   :  { %p2360_p7 = pnand %p2358_p6, %p2355_p5 }
0x2344   :  { %2363 = shalt.err (!%p2360_p7)
}
0x2345   :  { %1774 = dma.vmem_to_hbm [thread:$0]  %s1772_s20, 16, %s2753_s10, [#allocation4]  }
0x2346   :  { %2364 = dma.done.wait [#allocation4], 16  }
0x2347   :  { %2365 = vsyncadd [#allocation4], 4294967280 }
0x2348   :  { %1778 = vsyncpa [#allocation4], 1 }

</bundles_post_ra>
